<compile_context>
chip_gen: v7x
topology: tpu7x:2x2x1
jax: 0.10.0
libtpu: 0.0.40
codegen_flags: <defaults>
</compile_context>

<pallas_src>
import functools

import jax
import jax.numpy as jnp
from jax import lax
from jax.experimental import pallas as pl
from jax.experimental.pallas import tpu as pltpu


# ---------------------------------------------------------------------------
# Kernels
# ---------------------------------------------------------------------------


def _decomp_mxu_kernel(a_ref, x_ref, mean_ref, res_ref):
    """mean = A @ x for one (batch, channel-tile) block; res = x - mean."""
    xf = x_ref[...].astype(jnp.float32)                      # (L, TC)
    mean = jnp.dot(
        a_ref[...], xf,
        preferred_element_type=jnp.float32,
        precision=jax.lax.Precision.HIGHEST,
    )
    mean_ref[...] = mean.astype(mean_ref.dtype)
    res_ref[...] = (xf - mean).astype(res_ref.dtype)


def _decomp_roll_kernel(x_ref, mean_ref, res_ref, *, kernel_size):
    """Binary-doubling moving sum over a zero-padded series + rank-1 edge fix."""
    seq_len = x_ref.shape[0]
    pad = (kernel_size - 1) // 2

    xf = x_ref[...].astype(jnp.float32)                      # (L, TC)
    # (L, 1) row index — kept rank-1 so selects / broadcasts stay cheap.
    row = lax.broadcasted_iota(jnp.int32, (seq_len, 1), 0)

    def shift_zero(val, s, direction):
        # val shifted by `s` rows with zero fill (zero-padded series):
        #   direction > 0: out[i] = val[i + s]  (zero where i + s >= L)
        #   direction < 0: out[i] = val[i - s]  (zero where i - s < 0)
        if s >= seq_len:
            return jnp.zeros_like(val)
        if direction > 0:
            r = pltpu.roll(val, shift=seq_len - s, axis=0)
            return jnp.where(row >= seq_len - s, 0.0, r)
        r = pltpu.roll(val, shift=s, axis=0)
        return jnp.where(row < s, 0.0, r)

    def one_sided(direction):
        # sum_{t=1..pad} x_zeropad[i + direction*t] via binary doubling:
        # ~2*log2(pad) rolls instead of pad single-step rolls.
        if pad == 0:
            return jnp.zeros_like(xf)
        total = None
        total_len = 0
        block = shift_zero(xf, 1, direction)                 # window length 1
        block_len = 1
        rem = pad
        while True:
            if rem & 1:
                if total is None:
                    total, total_len = block, block_len
                else:
                    total = total + shift_zero(block, total_len, direction)
                    total_len += block_len
            rem >>= 1
            if rem == 0:
                break
            block = block + shift_zero(block, block_len, direction)
            block_len *= 2
        return total

    acc = xf + one_sided(+1) + one_sided(-1)

    # Rank-1 edge correction: the clamped (replicated) taps contribute
    # nbelow(i) copies of x[0] and nabove(i) copies of x[L-1].
    nbelow = jnp.maximum(pad - row, 0).astype(jnp.float32)                 # (L, 1)
    nabove = jnp.maximum(row - (seq_len - 1 - pad), 0).astype(jnp.float32)  # (L, 1)
    acc = acc + nbelow * xf[0:1, :] + nabove * xf[seq_len - 1:seq_len, :]

    mean = acc * (1.0 / kernel_size)
    mean_ref[...] = mean.astype(mean_ref.dtype)
    res_ref[...] = (xf - mean).astype(res_ref.dtype)


# ---------------------------------------------------------------------------
# Wrapper
# ---------------------------------------------------------------------------


def _avg_matrix(seq_len, kernel_size):
    """(L, L) moving-average matrix with edge replication folded into the first
    and last columns.  Rows sum to 1 for any kernel_size (including k > L)."""
    pad = (kernel_size - 1) // 2
    idx = jnp.arange(seq_len)
    band = (jnp.abs(idx[:, None] - idx[None, :]) <= pad).astype(jnp.float32)
    nbelow = jnp.maximum(pad - idx, 0).astype(jnp.float32)
    nabove = jnp.maximum(idx - (seq_len - 1 - pad), 0).astype(jnp.float32)
    a = band.at[:, 0].add(nbelow).at[:, seq_len - 1].add(nabove)
    return a / kernel_size


def _vmem_capacity_bytes():
    try:
        return int(pltpu.get_tpu_info().vmem_capacity_bytes)
    except Exception:  # conservative fallback (v7x has 64 MiB per core)
        return 64 * 1024 * 1024


def _estimate_vmem_bytes(seq_len, tc, itemsize, use_mxu):
    io = 6 * seq_len * tc * itemsize            # double-buffered 1 in + 2 out
    tmp = (4 if use_mxu else 8) * seq_len * tc * 4   # live f32 temporaries
    a = 2 * seq_len * seq_len * 4 if use_mxu else 0  # banded averaging matrix
    return io + tmp + a


def series_decomp(x, kernel_size, *, channel_block=None, use_mxu=None,
                  max_mxu_seq_len=1024):
    """Equivalent of the PyTorch series_decomp.forward.

    Args:
      x: (B, L, C) array.
      kernel_size: positive odd moving-average window size.
    Returns:
      (res, moving_mean), each (B, L, C).
    """
    if kernel_size < 1 or kernel_size % 2 == 0:
        # Even kernel_size would shrink L and make the PyTorch module itself
        # fail on the residual subtraction; require the supported (odd) case.
        raise ValueError("series_decomp requires a positive odd kernel_size")

    B, L, C = x.shape
    itemsize = jnp.dtype(x.dtype).itemsize

    vmem_cap = _vmem_capacity_bytes()
    budget = int(vmem_cap * 0.6)

    if use_mxu is None:
        use_mxu = L <= max_mxu_seq_len

    def pick_tc(use_mxu_path):
        if channel_block is not None:
            tc = int(channel_block)
            if tc != C and (tc % 128 != 0 or C % tc != 0):
                raise ValueError(
                    "channel_block must equal C or be a 128-multiple dividing C")
            return tc
        cands = {C}
        if C % 128 == 0:
            for t in (1024, 512, 256, 128):
                if t <= C and C % t == 0:
                    cands.add(t)
        cands = sorted(cands, reverse=True)
        tc = cands[-1]
        for t in cands:
            if _estimate_vmem_bytes(L, t, itemsize, use_mxu_path) <= budget:
                tc = t
                break
        # Keep at least 2 grid steps so both v7x TensorCores get work and the
        # BlockSpec pipeline can overlap DMA with compute.
        if B == 1 and tc == C and C % 256 == 0 and C // 2 >= 128:
            tc = C // 2
        return tc

    tc = pick_tc(use_mxu)
    if use_mxu and _estimate_vmem_bytes(L, tc, itemsize, True) > budget:
        # The band matrix would not fit the VMEM budget; use the roll path.
        use_mxu = False
        tc = pick_tc(False)

    num_c = pl.cdiv(C, tc)
    needed = _estimate_vmem_bytes(L, tc, itemsize, use_mxu)
    vmem_limit_bytes = int(min(max(2 * needed, 16 * 1024 * 1024),
                               int(vmem_cap * 0.75)))

    out_shape = (
        jax.ShapeDtypeStruct((B, L, C), x.dtype),   # moving_mean
        jax.ShapeDtypeStruct((B, L, C), x.dtype),   # res
    )
    xblock = pl.BlockSpec((None, L, tc), lambda b, c: (b, 0, c))
    out_specs = [
        pl.BlockSpec((None, L, tc), lambda b, c: (b, 0, c)),
        pl.BlockSpec((None, L, tc), lambda b, c: (b, 0, c)),
    ]
    compiler_params = pltpu.CompilerParams(
        dimension_semantics=("parallel", "parallel"),
        vmem_limit_bytes=vmem_limit_bytes,
    )

    if use_mxu:
        a = _avg_matrix(L, kernel_size)
        mean, res = pl.pallas_call(
            _decomp_mxu_kernel,
            out_shape=out_shape,
            grid_spec=pltpu.PrefetchScalarGridSpec(
                num_scalar_prefetch=0,
                grid=(B, num_c),
                in_specs=[
                    # Constant block index -> the (L, L) matrix is DMA'd once.
                    pl.BlockSpec((L, L), lambda b, c: (0, 0)),
                    xblock,
                ],
                out_specs=out_specs,
            ),
            compiler_params=compiler_params,
        )(a, x)
    else:
        kernel = functools.partial(_decomp_roll_kernel, kernel_size=kernel_size)
        mean, res = pl.pallas_call(
            kernel,
            out_shape=out_shape,
            grid_spec=pltpu.PrefetchScalarGridSpec(
                num_scalar_prefetch=0,
                grid=(B, num_c),
                in_specs=[xblock],
                out_specs=out_specs,
            ),
            compiler_params=compiler_params,
        )(x)

    # Match the PyTorch module's return order: (res, moving_mean)
    return res, mean


# ---------------------------------------------------------------------------
# Reference + self-test
# ---------------------------------------------------------------------------


def _reference_series_decomp(x, kernel_size):
    """Pure-JAX reference mirroring the PyTorch semantics."""
    pad = (kernel_size - 1) // 2
    front = jnp.repeat(x[:, 0:1, :], pad, axis=1)
    end = jnp.repeat(x[:, -1:, :], pad, axis=1)
    xpad = jnp.concatenate([front, x, end], axis=1)
    L = x.shape[1]
    windows = jnp.stack(
        [xpad[:, j:j + L, :] for j in range(kernel_size)], axis=0)
    mean = jnp.mean(windows, axis=0)
    return x - mean, mean


def _check(x, kernel_size, **kwargs):
    res, mean = series_decomp(x, kernel_size, **kwargs)
    jax.block_until_ready((res, mean))
    res_ref, mean_ref = _reference_series_decomp(x, kernel_size)
    assert res.shape == res_ref.shape and mean.shape == mean_ref.shape
    assert jnp.allclose(mean, mean_ref, atol=1e-4, rtol=1e-4), (
        f"mean mismatch (k={kernel_size}): "
        f"{float(jnp.max(jnp.abs(mean - mean_ref)))}")
    assert jnp.allclose(res, res_ref, atol=1e-4, rtol=1e-4), (
        f"res mismatch (k={kernel_size}): "
        f"{float(jnp.max(jnp.abs(res - res_ref)))}")


if __name__ == "__main__":
    key = jax.random.PRNGKey(0)
    B, L, C = 2, 8, 4
    x = jax.random.normal(key, (B, L, C), dtype=jnp.float32)

    # Case 1: typical odd window, MXU band-matrix path.
    _check(x, 5)
    # Case 2: window larger than the sequence (every tap clamps somewhere).
    _check(x, 25)
    # Case 3: degenerate kernel_size == 1 (mean == x, res == 0).
    _check(x, 1)
    # Case 4: forced roll / binary-doubling fallback path at a longer sequence.
    x_long = jax.random.normal(jax.random.PRNGKey(0), (2, 128, 4),
                               dtype=jnp.float32)
    _check(x_long, 25, use_mxu=False)

    print("KERNEL_OK")
</pallas_src>

<mosaic_0001>
module attributes {stable_mosaic.version = 11 : i64} {
  func.func @_decomp_mxu_kernel(%arg0: i32, %arg1: i32, %arg2: memref<8x8xf32, #tpu.memory_space<vmem>>, %arg3: memref<1x8x4xf32, #tpu.memory_space<vmem>>, %arg4: memref<1x8x4xf32, #tpu.memory_space<vmem>>, %arg5: memref<1x8x4xf32, #tpu.memory_space<vmem>>) attributes {dimension_semantics = [#tpu.dimension_semantics<parallel>, #tpu.dimension_semantics<parallel>], iteration_bounds = array<i64: 2, 1>, scalar_prefetch = 0 : i64, scratch_operands = 0 : i64, tpu.core_type = #tpu.core_type<tc>, window_params = [{pipeline_mode = #tpu.pipeline_mode<synchronous>, transform_indices = @transform_0, window_bounds = array<i64: 8, 8>}, {transform_indices = @transform_1, window_bounds = array<i64: 1, 8, 4>}, {transform_indices = @transform_2, window_bounds = array<i64: 1, 8, 4>}, {transform_indices = @transform_3, window_bounds = array<i64: 1, 8, 4>}]} {
    %c0 = arith.constant 0 : index
    %c0_0 = arith.constant 0 : index
    %c0_1 = arith.constant 0 : index
    %0 = vector.load %arg3[%c0, %c0_0, %c0_1] : memref<1x8x4xf32, #tpu.memory_space<vmem>>, vector<1x8x4xf32>
    %1 = vector.shape_cast %0 : vector<1x8x4xf32> to vector<8x4xf32>
    %c0_2 = arith.constant 0 : index
    %c0_3 = arith.constant 0 : index
    %2 = vector.load %arg2[%c0_2, %c0_3] : memref<8x8xf32, #tpu.memory_space<vmem>>, vector<8x8xf32>
    %cst = arith.constant dense<0.000000e+00> : vector<8x4xf32>
    %3 = tpu.matmul %2, %1, %cst {dimension_numbers = #tpu.dot_dimension_numbers<[1], [0], [0], [1], [0, 0, 1, 1], [], []>, precision = #tpu.contract_precision<fp32>} : vector<8x8xf32>, vector<8x4xf32>, vector<8x4xf32> -> vector<8x4xf32>
    %c0_4 = arith.constant 0 : index
    %c0_5 = arith.constant 0 : index
    %c0_6 = arith.constant 0 : index
    %4 = vector.load %arg4[%c0_4, %c0_5, %c0_6] : memref<1x8x4xf32, #tpu.memory_space<vmem>>, vector<1x8x4xf32>
    %5 = vector.shape_cast %4 : vector<1x8x4xf32> to vector<8x4xf32>
    %6 = vector.shape_cast %3 : vector<8x4xf32> to vector<1x8x4xf32>
    tpu.vector_store %arg4[%c0_4, %c0_5, %c0_6], %6 {strides = array<i32>} : memref<1x8x4xf32, #tpu.memory_space<vmem>>, vector<1x8x4xf32>,
    %7 = arith.subf %1, %3 : vector<8x4xf32>
    %c0_7 = arith.constant 0 : index
    %c0_8 = arith.constant 0 : index
    %c0_9 = arith.constant 0 : index
    %8 = vector.load %arg5[%c0_7, %c0_8, %c0_9] : memref<1x8x4xf32, #tpu.memory_space<vmem>>, vector<1x8x4xf32>
    %9 = vector.shape_cast %8 : vector<1x8x4xf32> to vector<8x4xf32>
    %10 = vector.shape_cast %7 : vector<8x4xf32> to vector<1x8x4xf32>
    tpu.vector_store %arg5[%c0_7, %c0_8, %c0_9], %10 {strides = array<i32>} : memref<1x8x4xf32, #tpu.memory_space<vmem>>, vector<1x8x4xf32>,
    return
  }
  func.func @transform_0(%arg0: i32, %arg1: i32) -> (i32, i32) {
    %c0_i32 = arith.constant 0 : i32
    %c0_i32_0 = arith.constant 0 : i32
    %c0_i32_1 = arith.constant 0 : i32
    return %c0_i32, %c0_i32_0 : i32, i32
  }
  func.func @transform_1(%arg0: i32, %arg1: i32) -> (i32, i32, i32) {
    %c0_i32 = arith.constant 0 : i32
    %c0_i32_0 = arith.constant 0 : i32
    return %arg0, %c0_i32, %arg1 : i32, i32, i32
  }
  func.func @transform_2(%arg0: i32, %arg1: i32) -> (i32, i32, i32) {
    %c0_i32 = arith.constant 0 : i32
    %c0_i32_0 = arith.constant 0 : i32
    return %arg0, %c0_i32, %arg1 : i32, i32, i32
  }
  func.func @transform_3(%arg0: i32, %arg1: i32) -> (i32, i32, i32) {
    %c0_i32 = arith.constant 0 : i32
    %c0_i32_0 = arith.constant 0 : i32
    return %arg0, %c0_i32, %arg1 : i32, i32, i32
  }
}

</mosaic_0001>

<bundles_post_ra>
// kernel: tpu_custom_call.1
= control target key start
LH: loop header
LB: loop body
LE: loop exit
PB: predicated region body
PF: predicated region fallthrough
CT: control target
= control target key end

     0   :  { %s920_s12 = smov 0   ;;  %s922_s13 = smov 0   ;;  %s970_s0 = inlined_call_operand.vmem [shape: f32[8,8], index: 0, kind: input, shape index: {}]   ;;  %s971_s1 = inlined_call_operand.vmem [shape: f32[2,8,4], index: 1, kind: input, shape index: {}]   ;;  %s972_s2 = inlined_call_operand.vmem [shape: f32[2,8,4], index: 2, kind: output, shape index: {0}]   ;;  %s973_s3 = inlined_call_operand.vmem [shape: f32[2,8,4], index: 3, kind: output, shape index: {1}]  }
   0x1   :  { %s924_s14 = smov 0  }
   0x2 LB: > { %s26_s15 = sadd.s32 1, %s892_s13  ;;  %p791_p0 = scmp.ge.s32.totalorder %s896_s14, 1  ;;  %s896_s14 = sphi %s924_s14, %s14_s14   ;;  %s892_s13 = sphi %s922_s13, %s975_s13   ;;  %s888_s12 = sphi %s920_s12, %s974_s12  }
   0x3   : > { %p28_p1 = scmp.ge.s32.totalorder %s26_s15, 2  ;;  %p160_p2 = scmp.lt.s32.totalorder %s896_s14, 3 }
   0x5   : > { %s977_s15 = smov (%p28_p1, %s26_s15), 0  ;;  %p161_p3 = pnand %p791_p0, %p160_p2 }
   0x6   : > { %p195_p4 = scmp.lt.s32.totalorder (!%p161_p3), %s888_s12, 1  ;;  %v217_v0 = vld [vmem:[%s970_s0] sm:$0xff] (!%p161_p3)  ;;  %vm218_vm0 = vcmask (!%p161_p3), 64512   ;;  %v898_v1 = vmov (!%p161_p3), 0.0   ;;  %vm899_vm1 = vmmov (!%p161_p3), 0   ;;  %vm668_vm2 = vcmask (!%p161_p3), 31744  }
   0x7   : > { %164 = sbr.rel (%p161_p3) target bundleno = 256 (0x100), region = 28  ;;  %824 = vmatprep.subr.mxu0 (!%p161_p3), %v898_v1  ;;  %826 = vmatprep.mubr.msk.f32.mxu0 (!%p161_p3), %vm899_vm1, %v898_v1  ;;  %v220_v2 = vsel (!%p161_p3), %vm218_vm0, %v217_v0, 0 }
   0x8   : > { %809 = vmatprep.subr.mxu1 (!%p161_p3), %v898_v1  ;;  %v288_v3 = vand.u32 (!%p161_p3), 4294901760, %v220_v2  ;;  %811 = vmatprep.mubr.msk.f32.mxu1 (!%p161_p3), %vm899_vm1, %v898_v1 }
   0xa   : > { %v289_v4 = vsub.f32 (!%p161_p3), %v220_v2, %v288_v3 }
   0xc   : > { %v290_v6 = vand.u32 (!%p161_p3), 4294901760, %v289_v4 }
   0xe   : > { %s979_s12 = smov (!%p195_p4, %s888_s12), 1  ;;  %v291_v8 = vsub.f32 %v289_v4, %v290_v6 }
   0xf   : > { %s943_s18 = sshll.u32 %s979_s12, 3 }
  0x10   : > { %s201_s21 = scalar_lea.vmem %s971_s1, %s943_s18  ;;  %v292_v10 = vand.u32 4294901760, %v291_v8  ;;  %s208_s24 = scalar_lea.vmem %s972_s2, %s943_s18 }
  0x11   : > { %v216_v5 = vld [vmem:[%s201_s21] sm:$0xff]  ;;  %s215_s27 = scalar_lea.vmem %s973_s3, %s943_s18 }
  0x12   : > { %v223_v7 = vand.u32 4294901760, %v216_v5 }
  0x14   : > { %v300_v9 = vsub.f32 %v216_v5, %v223_v7  ;;  %825 = vmatpush3.msra.mxu0 %v223_v7  ;;  %810 = vmatpush3.msra.mxu1 %v223_v7 }
  0x15   : > { %827 = vmatmul.mubr.f32.vlgmr.msra.gmra.mrb[0].mxu0 %v290_v6  ;;  %814 = vmatprep.subr.mxu1 %v898_v1 }
  0x16   : > { %829 = vmatprep.subr.mxu0 %v898_v1  ;;  %v301_v11 = vand.u32 4294901760, %v300_v9  ;;  %831 = vmatprep.mubr.msk.f32.mxu0 %vm899_vm1, %v898_v1 }
  0x17   : > { %812 = vmatmul.mubr.f32.vlgmr.msra.gmra.mrb[0].mxu1 %v292_v10 }
  0x18   : > { %v302_v12 = vsub.f32 %v300_v9, %v301_v11  ;;  %830 = vmatpush3.msra.mxu0 %v301_v11  ;;  %816 = vmatprep.mubr.msk.f32.mxu1 %vm899_vm1, %v898_v1 }
  0x19   : > { %834 = vmatprep.subr.mxu0 %v898_v1 }
  0x1a   : > { %v303_v13 = vand.u32 4294901760, %v302_v12 }
  0x1c   : > { %815 = vmatpush3.msra.mxu1 %v303_v13 }
  0x1d   : > { %832 = vmatmul.mubr.f32.vlgmr.msra.gmra.mrb[0].mxu0 %v288_v3  ;;  %819 = vmatprep.subr.mxu1 %v898_v1 }
  0x1e   : > { %835 = vmatpush3.msra.mxu0 %v223_v7  ;;  %836 = vmatprep.mubr.msk.f32.mxu0 %vm899_vm1, %v898_v1 }
  0x1f   : > { %817 = vmatmul.mubr.f32.vlgmr.msra.gmra.mrb[0].mxu1 %v288_v3 }
  0x20   : > { %820 = vmatpush3.msra.mxu1 %v300_v9  ;;  %821 = vmatprep.mubr.msk.f32.mxu1 %vm899_vm1, %v898_v1 }
  0x25   : > { %837 = vmatmul.mubr.f32.vlgmr.msra.gmra.mrb[0].mxu0 %v288_v3 }
  0x27   : > { %822 = vmatmul.mubr.f32.vlgmr.msra.gmra.mrb[0].mxu1 %v289_v4 }
  0xf8   : > { %v664_v14 = vpop.f32.mrb[0].mxu0 }
  0xf9   : > { %v838_v15 = vpop.f32.mrb[1].mxu0 }
  0xfa   : > { %v444_v16 = vpop.f32.mrb[0].mxu1 }
  0xfb   : > { %v839_v17 = vadd.f32 %v664_v14, %v444_v16  ;;  %v823_v18 = vpop.f32.mrb[1].mxu1 }
  0xfd   : > { %669 = vst.msk [vmem:[%s208_s24] sm:$0xff] %vm668_vm2, %v839_v17  ;;  %v670_v19 = vsub.f32 %v216_v5, %v839_v17 }
  0xff   : > { %671 = vst.msk [vmem:[%s215_s27] sm:$0xff] %vm668_vm2, %v670_v19 }
 0x100 PF: > { %s14_s14 = sadd.s32 1, %s896_s14   ;;  %s974_s12 = smov %s892_s13 }
 0x101   : > { %p11_p5 = scmp.ge.s32.totalorder %s14_s14, 4   ;;  %s975_s13 = smov %s977_s15 }
 0x103   :  { %13 = sbr.rel (!%p11_p5) target bundleno = 2 (0x2), region = 70 }

</bundles_post_ra>
